<compile_context>
chip_gen: v7x
topology: tpu7x:2x2x1
jax: 0.10.0
libtpu: 0.0.40
codegen_flags: <defaults>
</compile_context>

<pallas_src>
import functools

import jax
import jax.numpy as jnp
from jax.experimental import pallas as pl
from jax.experimental.pallas import tpu as pltpu


def _contrastive_loss_kernel(scores_ref, d_col_ref, d_row_ref, *out_refs,
                             margin, max_violation, tm):
    i = pl.program_id(0)

    s = scores_ref[...].astype(jnp.float32)       # [TM, N]  (single f32 cast)
    d_col = d_col_ref[...].astype(jnp.float32)    # [TM, 1]  diag for these rows
    d_row = d_row_ref[...].astype(jnp.float32)    # [1,  N]  full diag

    cost_s = jnp.maximum(margin + s - d_col, 0.0)   # caption-retrieval hinge
    cost_im = jnp.maximum(margin + s - d_row, 0.0)  # image-retrieval hinge

    if max_violation:
        row_ref, vec_ref = out_refs

        # Zero the diagonal entries that fall inside this row tile; needed so
        # the diagonal never wins the max (matches masked_fill_(I, 0)).
        r = jax.lax.broadcasted_iota(jnp.int32, s.shape, 0)
        c = jax.lax.broadcasted_iota(jnp.int32, s.shape, 1)
        eye = c == r + i * tm
        cost_s = jnp.where(eye, 0.0, cost_s)
        cost_im = jnp.where(eye, 0.0, cost_im)

        @pl.when(i == 0)
        def _():
            vec_ref[...] = jnp.zeros_like(vec_ref)  # costs are >= 0

        # Hardest negative caption per image: lane-direction max, one per row.
        row_ref[...] = jnp.max(cost_s, axis=1, keepdims=True)
        # Hardest negative image per caption: running column max kept in a
        # resident lane-dense [1, N] accumulator (no transposed reduction).
        vec_ref[...] = jnp.maximum(
            vec_ref[...], jnp.max(cost_im, axis=0, keepdims=True))
    else:
        (vec_ref,) = out_refs

        @pl.when(i == 0)
        def _():
            vec_ref[...] = jnp.zeros_like(vec_ref)

        # Fused single reduction of both hinge matrices.  Diagonal is NOT
        # masked here: each diagonal element contributes exactly relu(margin)
        # to cost_s and to cost_im, which the wrapper subtracts analytically.
        vec_ref[...] += jnp.sum(cost_s + cost_im, axis=0, keepdims=True)


def _pick_tm(n, bytes_per_elem, target_block_bytes=4 << 20):
    """Pick a row-tile height: whole matrix if small, else a multiple-of-8
    divisor of n keeping each double-buffered block well under VMEM limits."""
    if n * n * bytes_per_elem <= 2 * target_block_bytes:
        return n
    tm = max(8, target_block_bytes // (n * bytes_per_elem))
    tm = (tm // 8) * 8
    while tm >= 8:
        if n % tm == 0:
            return tm
        tm -= 8
    return n  # fallback: single full block (exempt from (8,128) rule)


def contrastive_loss(scores, margin=0.0, max_violation=False, tm=None):
    """Pallas TPU implementation of ContrastiveLoss.forward."""
    n = scores.shape[0]
    assert scores.shape == (n, n), "scores must be a square [N, N] matrix"
    if tm is None:
        tm = _pick_tm(n, jnp.dtype(scores.dtype).itemsize)
    assert n % tm == 0, "row tile must divide N"
    grid = (n // tm,)

    # Diagonal extracted once in the wrapper (N elements of HBM traffic).
    diag = jnp.diagonal(scores)
    d_col = diag.reshape(n, 1)
    d_row = diag.reshape(1, n)

    kernel = functools.partial(
        _contrastive_loss_kernel,
        margin=float(margin),
        max_violation=bool(max_violation),
        tm=tm,
    )

    in_specs = [
        pl.BlockSpec((tm, n), lambda i: (i, 0)),   # row tile of scores
        pl.BlockSpec((tm, 1), lambda i: (i, 0)),   # diag for these rows
        pl.BlockSpec((1, n), lambda i: (0, 0)),    # full diag (row vector)
    ]

    if max_violation:
        out_shape = (jax.ShapeDtypeStruct((n, 1), jnp.float32),   # row maxes
                     jax.ShapeDtypeStruct((1, n), jnp.float32))   # col maxes
        out_specs = (pl.BlockSpec((tm, 1), lambda i: (i, 0)),
                     pl.BlockSpec((1, n), lambda i: (0, 0)))
    else:
        out_shape = jax.ShapeDtypeStruct((1, n), jnp.float32)     # col sums
        out_specs = pl.BlockSpec((1, n), lambda i: (0, 0))

    out = pl.pallas_call(
        kernel,
        grid=grid,
        in_specs=in_specs,
        out_specs=out_specs,
        out_shape=out_shape,
        compiler_params=pltpu.CompilerParams(
            dimension_semantics=("arbitrary",)),
    )(scores, d_col, d_row)

    if max_violation:
        row_max, col_max = out
        return jnp.sum(row_max) + jnp.sum(col_max)

    # Analytic removal of the unmasked diagonal: each of the N diagonal
    # entries contributed relu(margin) to cost_s and to cost_im.
    correction = 2.0 * n * max(float(margin), 0.0)
    return jnp.sum(out) - correction


def _reference_loss(scores, margin=0.0, max_violation=False):
    """Pure-JAX reference mirroring the PyTorch code, for verification."""
    scores = scores.astype(jnp.float32)
    diag = jnp.diag(scores)
    cost_s = jnp.maximum(margin + scores - diag[:, None], 0.0)
    cost_im = jnp.maximum(margin + scores - diag[None, :], 0.0)
    eye = jnp.eye(scores.shape[0], dtype=bool)
    cost_s = jnp.where(eye, 0.0, cost_s)
    cost_im = jnp.where(eye, 0.0, cost_im)
    if max_violation:
        cost_s = cost_s.max(axis=1)
        cost_im = cost_im.max(axis=0)
    return cost_s.sum() + cost_im.sum()


if __name__ == "__main__":
    key = jax.random.PRNGKey(0)
    N = 128  # batch of 128 image-caption pairs -> scores is [128, 128]
    scores = jax.random.normal(key, (N, N), dtype=jnp.float32)

    ok = True
    for margin, max_violation in [(0.0, False), (0.2, False), (0.2, True)]:
        for tile in (32, None):  # tiled (grid of 4) and single-block paths
            got = contrastive_loss(
                scores, margin=margin, max_violation=max_violation, tm=tile)
            got = jax.block_until_ready(got)
            want = _reference_loss(
                scores, margin=margin, max_violation=max_violation)
            if not jnp.allclose(got, want, rtol=1e-4, atol=1e-3):
                ok = False
                print(f"MISMATCH margin={margin} max_violation={max_violation} "
                      f"tm={tile}: {got} vs {want}")

    if ok:
        print("KERNEL_OK")
</pallas_src>

<mosaic_0001>
module attributes {stable_mosaic.version = 11 : i64} {
  func.func @_contrastive_loss_kernel(%arg0: i32, %arg1: memref<32x128xf32, #tpu.memory_space<vmem>>, %arg2: memref<32x1xf32, #tpu.memory_space<vmem>>, %arg3: memref<1x128xf32, #tpu.memory_space<vmem>>, %arg4: memref<1x128xf32, #tpu.memory_space<vmem>>) attributes {dimension_semantics = [#tpu.dimension_semantics<arbitrary>], iteration_bounds = array<i64: 4>, scalar_prefetch = 0 : i64, scratch_operands = 0 : i64, tpu.core_type = #tpu.core_type<tc>, window_params = [{transform_indices = @transform_0, window_bounds = array<i64: 32, 128>}, {transform_indices = @transform_1, window_bounds = array<i64: 32, 1>}, {pipeline_mode = #tpu.pipeline_mode<synchronous>, transform_indices = @transform_2, window_bounds = array<i64: 1, 128>}, {pipeline_mode = #tpu.pipeline_mode<synchronous>, transform_indices = @transform_3, window_bounds = array<i64: 1, 128>}]} {
    %c0 = arith.constant 0 : index
    %c0_0 = arith.constant 0 : index
    %0 = vector.load %arg1[%c0, %c0_0] : memref<32x128xf32, #tpu.memory_space<vmem>>, vector<32x128xf32>
    %c0_1 = arith.constant 0 : index
    %c0_2 = arith.constant 0 : index
    %1 = vector.load %arg2[%c0_1, %c0_2] : memref<32x1xf32, #tpu.memory_space<vmem>>, vector<32x1xf32>
    %c0_3 = arith.constant 0 : index
    %c0_4 = arith.constant 0 : index
    %2 = vector.load %arg3[%c0_3, %c0_4] : memref<1x128xf32, #tpu.memory_space<vmem>>, vector<1x128xf32>
    %cst = arith.constant 0.000000e+00 : f32
    %3 = vector.broadcast %cst : f32 to vector<32x128xf32>
    %4 = arith.addf %3, %0 : vector<32x128xf32>
    %5 = vector.broadcast %1 : vector<32x1xf32> to vector<32x128xf32>
    %6 = arith.subf %4, %5 : vector<32x128xf32>
    %cst_5 = arith.constant 0.000000e+00 : f32
    %7 = vector.broadcast %cst_5 : f32 to vector<32x128xf32>
    %8 = arith.maximumf %6, %7 : vector<32x128xf32>
    %cst_6 = arith.constant 0.000000e+00 : f32
    %9 = vector.broadcast %cst_6 : f32 to vector<32x128xf32>
    %10 = arith.addf %9, %0 : vector<32x128xf32>
    %11 = vector.broadcast %2 : vector<1x128xf32> to vector<32x128xf32>
    %12 = arith.subf %10, %11 : vector<32x128xf32>
    %cst_7 = arith.constant 0.000000e+00 : f32
    %13 = vector.broadcast %cst_7 : f32 to vector<32x128xf32>
    %14 = arith.maximumf %12, %13 : vector<32x128xf32>
    %c0_i32 = arith.constant 0 : i32
    %15 = arith.cmpi eq, %arg0, %c0_i32 : i32
    %16 = arith.extui %15 : i1 to i32
    %c0_i32_8 = arith.constant 0 : i32
    %17 = arith.cmpi ne, %16, %c0_i32_8 : i32
    scf.if %17 {
      %cst_14 = arith.constant 0.000000e+00 : f32
      %24 = vector.broadcast %cst_14 : f32 to vector<1x128xf32>
      %c0_15 = arith.constant 0 : index
      %c0_16 = arith.constant 0 : index
      %25 = vector.load %arg4[%c0_15, %c0_16] : memref<1x128xf32, #tpu.memory_space<vmem>>, vector<1x128xf32>
      tpu.vector_store %arg4[%c0_15, %c0_16], %24 {strides = array<i32>} : memref<1x128xf32, #tpu.memory_space<vmem>>, vector<1x128xf32>,
    } else {
    }
    %c0_9 = arith.constant 0 : index
    %c0_10 = arith.constant 0 : index
    %18 = vector.load %arg4[%c0_9, %c0_10] : memref<1x128xf32, #tpu.memory_space<vmem>>, vector<1x128xf32>
    %19 = arith.addf %8, %14 : vector<32x128xf32>
    %cst_11 = arith.constant dense<0.000000e+00> : vector<128xf32>
    %20 = vector.multi_reduction <add>, %19, %cst_11 [0] : vector<32x128xf32> to vector<128xf32>
    %21 = vector.shape_cast %20 : vector<128xf32> to vector<1x128xf32>
    %22 = arith.addf %18, %21 : vector<1x128xf32>
    %c0_12 = arith.constant 0 : index
    %c0_13 = arith.constant 0 : index
    %23 = vector.load %arg4[%c0_12, %c0_13] : memref<1x128xf32, #tpu.memory_space<vmem>>, vector<1x128xf32>
    tpu.vector_store %arg4[%c0_12, %c0_13], %22 {strides = array<i32>} : memref<1x128xf32, #tpu.memory_space<vmem>>, vector<1x128xf32>,
    return
  }
  func.func @transform_0(%arg0: i32) -> (i32, i32) {
    %c0_i32 = arith.constant 0 : i32
    %c0_i32_0 = arith.constant 0 : i32
    return %arg0, %c0_i32 : i32, i32
  }
  func.func @transform_1(%arg0: i32) -> (i32, i32) {
    %c0_i32 = arith.constant 0 : i32
    %c0_i32_0 = arith.constant 0 : i32
    return %arg0, %c0_i32 : i32, i32
  }
  func.func @transform_2(%arg0: i32) -> (i32, i32) {
    %c0_i32 = arith.constant 0 : i32
    %c0_i32_0 = arith.constant 0 : i32
    %c0_i32_1 = arith.constant 0 : i32
    return %c0_i32, %c0_i32_0 : i32, i32
  }
  func.func @transform_3(%arg0: i32) -> (i32, i32) {
    %c0_i32 = arith.constant 0 : i32
    %c0_i32_0 = arith.constant 0 : i32
    %c0_i32_1 = arith.constant 0 : i32
    return %c0_i32, %c0_i32_0 : i32, i32
  }
}

</mosaic_0001>

<bundles_post_ra>
// kernel: tpu_custom_call.1
= control target key start
LH: loop header
LB: loop body
LE: loop exit
PB: predicated region body
PF: predicated region fallthrough
CT: control target
= control target key end

     0   :  { %8 = vsyncpa [#allocation3], 0  ;;  %s409_s12 = smov 0   ;;  %s456_s0 = inlined_call_operand.vmem [shape: f32[128,128], index: 0, kind: input, shape index: {}]   ;;  %s457_s1 = inlined_call_operand.vmem [shape: f32[128,1], index: 1, kind: input, shape index: {}]   ;;  %s458_s2 = inlined_call_operand.vmem [shape: f32[1,128], index: 2, kind: input, shape index: {}]   ;;  %s459_s3 = inlined_call_operand.hbm [shape: f32[1,128], index: 3, kind: output, shape index: {}]  }
   0x1 LB: > { %s415_s13 = sadd.s32 4294967295, %s384_s12   ;;  %p318_p0 = scmp.ge.s32.totalorder %s384_s12, 1  ;;  %s384_s12 = sphi %s409_s12, %s14_s12  }
   0x2   : > { %p145_p1 = scmp.lt.s32.totalorder %s384_s12, 5 }
   0x4   : > { %p146_p2 = pnand %p318_p0, %p145_p1 }
   0x5   : > { %s319_s14 = sshll.u32 (!%p146_p2), %s415_s13, 2  ;;  %v386_v0 = vmov (!%p146_p2), 0   ;;  %v323_v3 = vld [vmem:[%s458_s2] ss:$0 sm:$0xff] (!%p146_p2)  ;;  %p324_p4 = scmp.ne.s32.totalorder (!%p146_p2), %s415_s13, 0 }
   0x6   : > { %149 = sbr.rel (%p146_p2) target bundleno = 190 (0xbe), region = 32  ;;  %347 = vset.pattern.permute.xlu1 (!%p146_p2), %v386_v0  ;;  %346 = vset.pattern.permute.xlu0 (!%p146_p2), %v386_v0  ;;  %p170_p3 = scmp.lt.s32.totalorder (!%p146_p2), %s319_s14, 15 }
   0xd   : > { %s461_s14 = smov (!%p170_p3, %s319_s14), 15  ;;  %v387_v30 = vmov (!%p324_p4), 0.0  }
   0xe   : > { %s320_s15 = sshll.u32 %s461_s14, 3  ;;  %240 = vst [vmem:[#allocation2] sm:$0x1] (!%p324_p4), %v387_v30 }
   0xf   : > { %s179_s18 = scalar_lea.vmem %s457_s1, %s320_s15  ;;  %s173_s21 = scalar_lea.vmem %s456_s0, %s320_s15 }
  0x10   : > { %v187_v1 = vld [vmem:[%s179_s18 + $0x10] sm:$0xff]  ;;  %v185_v2 = vld [vmem:[%s179_s18] sm:$0xff]  ;;  %v188_v4 = vld [vmem:[%s179_s18 + $0x18] sm:$0xff] }
  0x11   : > { %206 = vperm.xlu1 %347, %v187_v1   ;;  %196 = vperm.xlu0 %346, %v185_v2   ;;  %v186_v5 = vld [vmem:[%s179_s18 + $0x8] sm:$0xff]  ;;  %v183_v6 = vld [vmem:[%s173_s21 + $0x10] sm:$0xff]  ;;  %v181_v7 = vld [vmem:[%s173_s21] sm:$0xff] }
  0x12   : > { %v230_v8 = vsub.f32 %v183_v6, %v323_v3  ;;  %v228_v9 = vsub.f32 %v181_v7, %v323_v3  ;;  %v184_v10 = vld [vmem:[%s173_s21 + $0x18] sm:$0xff]  ;;  %v182_v11 = vld [vmem:[%s173_s21 + $0x8] sm:$0xff] }
  0x13   : > { %v231_v14 = vsub.f32 %v184_v10, %v323_v3  ;;  %v229_v15 = vsub.f32 %v182_v11, %v323_v3 }
  0x14   : > { %v234_v12 = vmax.f32 %v230_v8, 0.0  ;;  %v232_v13 = vmax.f32 %v228_v9, 0.0 }
  0x15   : > { %211 = vperm.xlu1 %347, %v188_v4   ;;  %201 = vperm.xlu0 %346, %v186_v5   ;;  %v235_v16 = vmax.f32 %v231_v14, 0.0  ;;  %v233_v17 = vmax.f32 %v229_v15, 0.0 }
  0x90   : > { %v207_v18 = vpop.permute.xlu1 %206  ;;  %v197_v19 = vpop.permute.xlu0 %196 }
  0x91   : > { %v216_v20 = vsub.f32 %v183_v6, %v207_v18  ;;  %v214_v21 = vsub.f32 %v181_v7, %v197_v19  ;;  %239 = sbr.rel (%p324_p4) target bundleno = 152 (0x98), region = 36 }
  0x93   : > { %v220_v22 = vmax.f32 %v216_v20, 0.0  ;;  %v218_v23 = vmax.f32 %v214_v21, 0.0 }
  0x94   : > { %v212_v24 = vpop.permute.xlu1 %211  ;;  %v202_v25 = vpop.permute.xlu0 %201 }
  0x95   : > { %v217_v26 = vsub.f32 %v184_v10, %v212_v24  ;;  %v215_v27 = vsub.f32 %v182_v11, %v202_v25 }
  0x97   : > { %v221_v28 = vmax.f32 %v217_v26, 0.0  ;;  %v219_v29 = vmax.f32 %v215_v27, 0.0 }
  0x98 PF: > { %v242_v31 = vadd.f32 %v232_v13, %v218_v23  ;;  %v244_v33 = vadd.f32 %v234_v12, %v220_v22  ;;  %v241_v43 = vld [vmem:[#allocation2] sm:$0x1]  ;;  %s388_s24 = smov [#allocation2]   ;;  %p333_p5 = scmp.eq.s32.totalorder %s415_s13, 3 }
  0x99   : > { %v243_v32 = vadd.f32 %v233_v17, %v219_v29  ;;  %v245_v34 = vadd.f32 %v235_v16, %v221_v28  ;;  %s264_s25 = sshll.u32 %s388_s24, 4  ;;  %s265_s25 = int_to_ptr.vmem [resolvable:$true] %s264_s25 }
  0x9a   : > { %s348_s26 = scalar_lea.vmem %s265_s25, 16  ;;  %s354_s27 = scalar_lea.vmem %s265_s25, 32 }
  0x9b   : > { %v246_v35 = vadd.f32 %v243_v32, %v242_v31  ;;  %p349_p6 = scmp.ne.s32.totalorder %s265_s25, %s348_s26  ;;  %p355_p9 = scmp.lt.s32.totalorder %s265_s25, %s265_s25 }
  0x9c   : > { %p356_p10 = scmp.lt.s32.totalorder %s354_s27, %s348_s26 }
  0x9d   : > { %v247_v36 = vadd.f32 %v246_v35, %v244_v33  ;;  %p350_p7 = pnand %p349_p6, %p333_p5 }
  0x9e   : > { %p357_p11 = por %p356_p10, %p355_p9 }
  0x9f   : > { %v248_v37 = vadd.f32 %v247_v36, %v245_v34  ;;  %p351_p8 = pneg %p350_p7 }
  0xa1   : > { %v249_v38 = vrot.slane %v248_v37, 4  ;;  %p358_p12 = pnand %p357_p11, %p351_p8 }
  0xa3   : > { %v250_v39 = vadd.f32 %v249_v38, %v248_v37 }
  0xa5   : > { %v251_v40 = vrot.slane %v250_v39, 2 }
  0xa7   : > { %v252_v41 = vadd.f32 %v251_v40, %v250_v39 }
  0xa9   : > { %v253_v42 = vrot.slane %v252_v41, 1 }
  0xab   : > { %v254_v44 = vadd.f32 %v253_v42, %v252_v41 }
  0xad   : > { %v255_v45 = vadd.f32 %v254_v44, %v241_v43 }
  0xaf   : > { %256 = vst [vmem:[#allocation2] sm:$0x1] %v255_v45 }
  0xb0   : > { %361 = shalt.err (!%p358_p12)
}
  0xb1   : > { %s362_s30 = scalar_lea.hbm %s459_s3, 16 }
  0xb2   : > { %p363_p13 = scmp.ne.s32.totalorder %s459_s3, %s362_s30  ;;  %p368_p2 = scmp.lt.u32.totalorder %s362_s30, %s459_s3 }
  0xb4   : > { %p364_p0 = pnand %p363_p13, %p333_p5 }
  0xb6   : > { %p365_p1 = pneg %p364_p0 }
  0xb8   : > { %p370_p3 = pnand %p368_p2, %p365_p1 }
  0xba   : > { %373 = shalt.err (!%p370_p3)
}
  0xbb   : > { %330 = dma.vmem_to_hbm [thread:$0]  (%p333_p5), %s265_s25, 16, %s459_s3, [#allocation3]  }
  0xbc   : > { %379 = dma.done.wait (%p333_p5), [#allocation3], 16  }
  0xbd   : > { %381 = vsyncadd (%p333_p5), [#allocation3], 4294967280 }
  0xbe PF: > { %s14_s12 = sadd.s32 1, %s384_s12  }
  0xbf   : > { %p11_p4 = scmp.ge.s32.totalorder %s14_s12, 6  }
  0xc1   :  { %13 = sbr.rel (!%p11_p4) target bundleno = 1 (0x1), region = 66 }
  0xc8   :  { %277 = vsyncpa [#allocation3], 1 }
  0xc9   :  { %279 = vsyncpa [#allocation3 + $0x1], 1 }

</bundles_post_ra>
